<compile_context>
chip_gen: v7x
topology: tpu7x:2x2x1
jax: 0.10.0
libtpu: 0.0.40
codegen_flags: <defaults>
</compile_context>

<pallas_src>
import functools

import jax
import jax.numpy as jnp
from jax.experimental import pallas as pl
from jax.experimental.pallas import tpu as pltpu

_LANE = 128      # lane-dense padding for weight N dims / output (v5e MXU-native; see TODO for 256)
_SUBLANE = 8     # f32 sublane granularity for the batch (row) tile
_VMEM_WEIGHT_BUDGET = 28 * 1024 * 1024   # ~half of v7x's 64 MiB physical VMEM

# Flipped to False automatically if this jax build rejects pl.Buffered(1) for the main pipeline.
_SINGLE_BUFFER_WEIGHTS_OK = True


def _round_up(n, m):
    return ((n + m - 1) // m) * m


def _cdiv(a, b):
    return (a + b - 1) // b


def _mlp_kernel(*refs, n_layers, compute_dtype):
    """Fused MLP. refs = (x_ref, w0, b0, w1, b1, ..., w_{L-1}, b_{L-1}, out_ref).

    x tile: (B_tile, in_sz) in the caller's dtype. Each w_i: (K_i, N_i_pad) in compute_dtype,
    each b_i: (1, N_i_pad) f32. Hidden layers use ReLU; the final layer uses sigmoid.
    Dropout is identity at inference.
    """
    x_ref = refs[0]
    out_ref = refs[-1]
    wb_refs = refs[1:-1]

    h = x_ref[...].astype(jnp.float32)
    # Statically unrolled per-layer loop (layer count is a small Python int).
    for i in range(n_layers):
        w = wb_refs[2 * i][...]                          # VMEM-resident weights (1 DMA total)
        b = wb_refs[2 * i + 1][...]                      # (1, N_pad) f32 bias, broadcast over rows
        acc = jnp.dot(h.astype(compute_dtype), w,        # MXU, f32 accumulation
                      preferred_element_type=jnp.float32)
        acc = acc + b
        if i < n_layers - 1:
            h = jnp.maximum(acc, 0.0)                    # ReLU (f32 VPU — v5e-safe)
        else:
            h = jax.nn.sigmoid(acc)                      # f32 elementwise (EUP)
    out_ref[...] = h.astype(out_ref.dtype)


def prepare_params(params, *, compute_dtype=jnp.bfloat16):
    """Pad + cast parameters ONCE (hoisted out of the per-call path).

    params: list of (W (fan_in, fan_out), b (fan_out,)).
    Layer 0 keeps its true K (x is consumed unpadded); all other K dims and every N dim are
    zero-padded to multiples of 128 so MXU operands and output stores are lane-dense. Zero
    padding is mathematically inert (padded activation columns stay exactly 0 through ReLU).
    Weights are stored in compute_dtype (bf16 default); biases stay f32 for the f32 epilogue.
    """
    layers = []
    for li, (w, b) in enumerate(params):
        fi, fo = w.shape
        k_pad = fi if li == 0 else _round_up(fi, _LANE)
        n_pad = _round_up(fo, _LANE)
        w_p = jnp.pad(w.astype(jnp.float32), ((0, k_pad - fi), (0, n_pad - fo))).astype(compute_dtype)
        b_p = jnp.pad(b.astype(jnp.float32), (0, n_pad - fo)).reshape(1, n_pad)
        layers.append((w_p, b_p))
    return {
        "layers": layers,
        "in_sz": params[0][0].shape[0],
        "out_sz": params[-1][0].shape[1],
    }


def multi_layer_network_forward(x, prepared, *, block_b=512):
    """x: (B, in_sz); prepared: output of prepare_params(). Returns (B, out_sz)."""
    layers = prepared["layers"]
    out_sz = prepared["out_sz"]
    B, in_sz = x.shape
    assert in_sz == prepared["in_sz"], "x feature dim does not match prepared params"
    n_layers = len(layers)
    compute_dtype = layers[0][0].dtype
    out_pad = layers[-1][0].shape[1]

    # ---------------- batch tiling ----------------
    b_tile = _round_up(min(block_b, B), _SUBLANE)
    if B > _SUBLANE:
        # v7x has 2 TensorCores: keep >= 2 grid steps on the "parallel" batch axis when possible.
        b_tile = min(b_tile, _round_up(_cdiv(B, 2), _SUBLANE))
    b_pad = _round_up(B, b_tile)
    grid = (b_pad // b_tile,)

    # x is NOT lane-padded here: its block's last dim equals the full array dim, so Mosaic pads
    # in VMEM for free. Only a (rare) batch-remainder pad is done in the wrapper.
    x_p = x if b_pad == B else jnp.pad(x, ((0, b_pad - B), (0, 0)))

    # ---------------- VMEM budget ----------------
    w_bytes = sum(w.size * w.dtype.itemsize + b.size * b.dtype.itemsize for w, b in layers)
    if w_bytes > _VMEM_WEIGHT_BUDGET:
        # TODO(synk): stream weights from HBM (memory_space=pl.ANY + pltpu.emit_pipeline over
        # K/N tiles, 256-wide on v6e/v7x, with a VMEM f32 accumulator) once h_sz outgrows
        # v7x's 64 MiB VMEM. The all-resident layout below is for small/medium models.
        raise NotImplementedError(
            f"resident weights ({w_bytes / 2**20:.1f} MiB) exceed the v7x VMEM weight budget")

    act_bytes = 2 * b_tile * (in_sz + out_pad) * x.dtype.itemsize      # double-buffered x/out tiles
    vmem_limit = int(min(64 << 20, max(32 << 20, 2 * w_bytes + act_bytes + (8 << 20))))

    # ---------------- cost estimate (helps XLA overlap the custom call) ----------------
    flops = int(2 * b_pad * sum(w.shape[0] * w.shape[1] for w, _ in layers))
    bytes_accessed = int(x_p.size * x_p.dtype.itemsize + w_bytes
                         + b_pad * out_pad * x.dtype.itemsize)
    cost = pl.CostEstimate(flops=flops, transcendentals=int(b_pad * out_pad),
                           bytes_accessed=bytes_accessed)

    kernel = functools.partial(_mlp_kernel, n_layers=n_layers, compute_dtype=compute_dtype)
    out_shape = jax.ShapeDtypeStruct((b_pad, out_pad), x.dtype)
    out_spec = pl.BlockSpec((b_tile, out_pad), lambda i: (i, 0))
    compiler_params = pltpu.CompilerParams(
        dimension_semantics=("parallel",),   # independent batch tiles -> megacore / dual-TC shard
        vmem_limit_bytes=vmem_limit,
    )

    def build_and_run(single_buffer_weights):
        in_specs = [pl.BlockSpec((b_tile, in_sz), lambda i: (i, 0))]
        flat_inputs = [x_p]
        for w_p, b_p in layers:
            flat_inputs += [w_p, b_p]
            if single_buffer_weights:
                # Grid-invariant operands: 1 buffer instead of the default 2 halves weight VMEM.
                in_specs += [
                    pl.BlockSpec(w_p.shape, lambda i: (0, 0), pipeline_mode=pl.Buffered(1)),
                    pl.BlockSpec(b_p.shape, lambda i: (0, 0), pipeline_mode=pl.Buffered(1)),
                ]
            else:
                in_specs += [
                    pl.BlockSpec(w_p.shape, lambda i: (0, 0)),
                    pl.BlockSpec(b_p.shape, lambda i: (0, 0)),
                ]
        return pl.pallas_call(
            kernel,
            out_shape=out_shape,
            grid=grid,
            in_specs=in_specs,
            out_specs=out_spec,
            compiler_params=compiler_params,
            cost_estimate=cost,
        )(*flat_inputs)

    global _SINGLE_BUFFER_WEIGHTS_OK
    if _SINGLE_BUFFER_WEIGHTS_OK:
        try:
            y_p = build_and_run(True)
        except Exception:
            # This jax build rejects Buffered(1) on the main pipeline -> default double buffering.
            _SINGLE_BUFFER_WEIGHTS_OK = False
            y_p = build_and_run(False)
    else:
        y_p = build_and_run(False)

    # Padded output columns (sigmoid(0)=0.5) and padded batch rows are sliced off here.
    return y_p[:B, :out_sz]


# ------------------------- parameter init (matches the PyTorch module) -------------------------
def kaiming_uniform_relu(key, fan_in, fan_out, dtype=jnp.float32):
    """torch.nn.init.kaiming_uniform_(weight, nonlinearity='relu') for nn.Linear weight
    (fan_out, fan_in), returned transposed as (fan_in, fan_out) so the kernel does x @ W."""
    gain = jnp.sqrt(2.0)
    bound = gain * jnp.sqrt(3.0 / fan_in)
    w = jax.random.uniform(key, (fan_out, fan_in), dtype=dtype, minval=-bound, maxval=bound)
    return w.T


def init_params(key, in_sz, h_sz, out_sz, layers, dtype=jnp.float32):
    params = []
    dims = [(in_sz, h_sz)] + [(h_sz, h_sz)] * layers + [(h_sz, out_sz)]
    for fi, fo in dims:
        key, sub = jax.random.split(key)
        params.append((kaiming_uniform_relu(sub, fi, fo, dtype), jnp.zeros((fo,), dtype)))
    return params


def _reference_forward(x, params, compute_dtype=jnp.float32):
    """Pure-JAX reference mirroring the kernel's casting semantics."""
    h = x.astype(jnp.float32)
    for i, (w, b) in enumerate(params):
        acc = jnp.dot(h.astype(compute_dtype), w.astype(compute_dtype),
                      preferred_element_type=jnp.float32) + b.astype(jnp.float32)
        h = jax.nn.sigmoid(acc) if i == len(params) - 1 else jnp.maximum(acc, 0.0)
    return h


if __name__ == "__main__":
    # Small shapes consistent with the module: in_sz=32, h_sz=32, out_sz=16, layers=2.
    in_sz, h_sz, out_sz, layers, dropout_prob = 32, 32, 16, 2, 0.1  # dropout inactive at inference
    batch = 8

    key = jax.random.PRNGKey(0)
    key_x, key_p = jax.random.split(key)
    x = jax.random.normal(key_x, (batch, in_sz), dtype=jnp.float32)
    params = init_params(key_p, in_sz, h_sz, out_sz, layers)

    # --- f32 MXU-input path (bit-close to the PyTorch module) ---
    prep_f32 = prepare_params(params, compute_dtype=jnp.float32)
    out_f32 = jax.block_until_ready(multi_layer_network_forward(x, prep_f32))
    assert out_f32.shape == (batch, out_sz)
    assert bool(jnp.all((out_f32 >= 0.0) & (out_f32 <= 1.0)))          # sigmoid range sanity
    ref_f32 = _reference_forward(x, params, compute_dtype=jnp.float32)
    assert bool(jnp.allclose(out_f32, ref_f32, atol=1e-3, rtol=1e-3))

    # --- bf16 MXU-input path (default: native MXU dtype, half the weight HBM/VMEM traffic) ---
    prep_bf16 = prepare_params(params)                                  # compute_dtype=bfloat16
    out_bf16 = jax.block_until_ready(multi_layer_network_forward(x, prep_bf16))
    assert out_bf16.shape == (batch, out_sz)
    assert bool(jnp.all((out_bf16 >= 0.0) & (out_bf16 <= 1.0)))
    ref_bf16 = _reference_forward(x, params, compute_dtype=jnp.bfloat16)
    assert bool(jnp.allclose(out_bf16, ref_bf16, atol=1e-2, rtol=1e-2))

    print("KERNEL_OK")
</pallas_src>

<mosaic_0001>
module attributes {stable_mosaic.version = 11 : i64} {
  func.func @_mlp_kernel(%arg0: i32, %arg1: memref<8x32xf32, #tpu.memory_space<vmem>>, %arg2: memref<32x128xf32, #tpu.memory_space<vmem>>, %arg3: memref<1x128xf32, #tpu.memory_space<vmem>>, %arg4: memref<128x128xf32, #tpu.memory_space<vmem>>, %arg5: memref<1x128xf32, #tpu.memory_space<vmem>>, %arg6: memref<128x128xf32, #tpu.memory_space<vmem>>, %arg7: memref<1x128xf32, #tpu.memory_space<vmem>>, %arg8: memref<128x128xf32, #tpu.memory_space<vmem>>, %arg9: memref<1x128xf32, #tpu.memory_space<vmem>>, %arg10: memref<8x128xf32, #tpu.memory_space<vmem>>) attributes {dimension_semantics = [#tpu.dimension_semantics<parallel>], iteration_bounds = array<i64: 1>, scalar_prefetch = 0 : i64, scratch_operands = 0 : i64, tpu.core_type = #tpu.core_type<tc>, window_params = [{transform_indices = @transform_0, window_bounds = array<i64: 8, 32>}, {pipeline_mode = #tpu.pipeline_mode<synchronous>, transform_indices = @transform_1, window_bounds = array<i64: 32, 128>}, {pipeline_mode = #tpu.pipeline_mode<synchronous>, transform_indices = @transform_2, window_bounds = array<i64: 1, 128>}, {pipeline_mode = #tpu.pipeline_mode<synchronous>, transform_indices = @transform_3, window_bounds = array<i64: 128, 128>}, {pipeline_mode = #tpu.pipeline_mode<synchronous>, transform_indices = @transform_4, window_bounds = array<i64: 1, 128>}, {pipeline_mode = #tpu.pipeline_mode<synchronous>, transform_indices = @transform_5, window_bounds = array<i64: 128, 128>}, {pipeline_mode = #tpu.pipeline_mode<synchronous>, transform_indices = @transform_6, window_bounds = array<i64: 1, 128>}, {pipeline_mode = #tpu.pipeline_mode<synchronous>, transform_indices = @transform_7, window_bounds = array<i64: 128, 128>}, {pipeline_mode = #tpu.pipeline_mode<synchronous>, transform_indices = @transform_8, window_bounds = array<i64: 1, 128>}, {transform_indices = @transform_9, window_bounds = array<i64: 8, 128>}]} {
    %c0 = arith.constant 0 : index
    %c0_0 = arith.constant 0 : index
    %0 = vector.load %arg1[%c0, %c0_0] : memref<8x32xf32, #tpu.memory_space<vmem>>, vector<8x32xf32>
    %c0_1 = arith.constant 0 : index
    %c0_2 = arith.constant 0 : index
    %1 = vector.load %arg2[%c0_1, %c0_2] : memref<32x128xf32, #tpu.memory_space<vmem>>, vector<32x128xf32>
    %c0_3 = arith.constant 0 : index
    %c0_4 = arith.constant 0 : index
    %2 = vector.load %arg3[%c0_3, %c0_4] : memref<1x128xf32, #tpu.memory_space<vmem>>, vector<1x128xf32>
    %cst = arith.constant dense<0.000000e+00> : vector<8x128xf32>
    %3 = tpu.matmul %0, %1, %cst {dimension_numbers = #tpu.dot_dimension_numbers<[1], [0], [0], [1], [0, 0, 1, 1], [], []>} : vector<8x32xf32>, vector<32x128xf32>, vector<8x128xf32> -> vector<8x128xf32>
    %4 = vector.broadcast %2 : vector<1x128xf32> to vector<8x128xf32>
    %5 = arith.addf %3, %4 : vector<8x128xf32>
    %cst_5 = arith.constant 0.000000e+00 : f32
    %6 = vector.broadcast %cst_5 : f32 to vector<8x128xf32>
    %7 = arith.maximumf %5, %6 : vector<8x128xf32>
    %c0_6 = arith.constant 0 : index
    %c0_7 = arith.constant 0 : index
    %8 = vector.load %arg4[%c0_6, %c0_7] : memref<128x128xf32, #tpu.memory_space<vmem>>, vector<128x128xf32>
    %c0_8 = arith.constant 0 : index
    %c0_9 = arith.constant 0 : index
    %9 = vector.load %arg5[%c0_8, %c0_9] : memref<1x128xf32, #tpu.memory_space<vmem>>, vector<1x128xf32>
    %cst_10 = arith.constant dense<0.000000e+00> : vector<8x128xf32>
    %10 = tpu.matmul %7, %8, %cst_10 {dimension_numbers = #tpu.dot_dimension_numbers<[1], [0], [0], [1], [0, 0, 1, 1], [], []>} : vector<8x128xf32>, vector<128x128xf32>, vector<8x128xf32> -> vector<8x128xf32>
    %11 = vector.broadcast %9 : vector<1x128xf32> to vector<8x128xf32>
    %12 = arith.addf %10, %11 : vector<8x128xf32>
    %cst_11 = arith.constant 0.000000e+00 : f32
    %13 = vector.broadcast %cst_11 : f32 to vector<8x128xf32>
    %14 = arith.maximumf %12, %13 : vector<8x128xf32>
    %c0_12 = arith.constant 0 : index
    %c0_13 = arith.constant 0 : index
    %15 = vector.load %arg6[%c0_12, %c0_13] : memref<128x128xf32, #tpu.memory_space<vmem>>, vector<128x128xf32>
    %c0_14 = arith.constant 0 : index
    %c0_15 = arith.constant 0 : index
    %16 = vector.load %arg7[%c0_14, %c0_15] : memref<1x128xf32, #tpu.memory_space<vmem>>, vector<1x128xf32>
    %cst_16 = arith.constant dense<0.000000e+00> : vector<8x128xf32>
    %17 = tpu.matmul %14, %15, %cst_16 {dimension_numbers = #tpu.dot_dimension_numbers<[1], [0], [0], [1], [0, 0, 1, 1], [], []>} : vector<8x128xf32>, vector<128x128xf32>, vector<8x128xf32> -> vector<8x128xf32>
    %18 = vector.broadcast %16 : vector<1x128xf32> to vector<8x128xf32>
    %19 = arith.addf %17, %18 : vector<8x128xf32>
    %cst_17 = arith.constant 0.000000e+00 : f32
    %20 = vector.broadcast %cst_17 : f32 to vector<8x128xf32>
    %21 = arith.maximumf %19, %20 : vector<8x128xf32>
    %c0_18 = arith.constant 0 : index
    %c0_19 = arith.constant 0 : index
    %22 = vector.load %arg8[%c0_18, %c0_19] : memref<128x128xf32, #tpu.memory_space<vmem>>, vector<128x128xf32>
    %c0_20 = arith.constant 0 : index
    %c0_21 = arith.constant 0 : index
    %23 = vector.load %arg9[%c0_20, %c0_21] : memref<1x128xf32, #tpu.memory_space<vmem>>, vector<1x128xf32>
    %cst_22 = arith.constant dense<0.000000e+00> : vector<8x128xf32>
    %24 = tpu.matmul %21, %22, %cst_22 {dimension_numbers = #tpu.dot_dimension_numbers<[1], [0], [0], [1], [0, 0, 1, 1], [], []>} : vector<8x128xf32>, vector<128x128xf32>, vector<8x128xf32> -> vector<8x128xf32>
    %25 = vector.broadcast %23 : vector<1x128xf32> to vector<8x128xf32>
    %26 = arith.addf %24, %25 : vector<8x128xf32>
    %27 = arith.negf %26 : vector<8x128xf32>
    %28 = math.exp %27 : vector<8x128xf32>
    %cst_23 = arith.constant 1.000000e+00 : f32
    %29 = vector.broadcast %cst_23 : f32 to vector<8x128xf32>
    %30 = arith.addf %29, %28 : vector<8x128xf32>
    %31 = arith.divf %29, %30 : vector<8x128xf32>
    %c0_24 = arith.constant 0 : index
    %c0_25 = arith.constant 0 : index
    %32 = vector.load %arg10[%c0_24, %c0_25] : memref<8x128xf32, #tpu.memory_space<vmem>>, vector<8x128xf32>
    tpu.vector_store %arg10[%c0_24, %c0_25], %31 {strides = array<i32>} : memref<8x128xf32, #tpu.memory_space<vmem>>, vector<8x128xf32>,
    return
  }
  func.func @transform_0(%arg0: i32) -> (i32, i32) {
    %c0_i32 = arith.constant 0 : i32
    %c0_i32_0 = arith.constant 0 : i32
    return %arg0, %c0_i32 : i32, i32
  }
  func.func @transform_1(%arg0: i32) -> (i32, i32) {
    %c0_i32 = arith.constant 0 : i32
    %c0_i32_0 = arith.constant 0 : i32
    %c0_i32_1 = arith.constant 0 : i32
    return %c0_i32, %c0_i32_0 : i32, i32
  }
  func.func @transform_2(%arg0: i32) -> (i32, i32) {
    %c0_i32 = arith.constant 0 : i32
    %c0_i32_0 = arith.constant 0 : i32
    %c0_i32_1 = arith.constant 0 : i32
    return %c0_i32, %c0_i32_0 : i32, i32
  }
  func.func @transform_3(%arg0: i32) -> (i32, i32) {
    %c0_i32 = arith.constant 0 : i32
    %c0_i32_0 = arith.constant 0 : i32
    %c0_i32_1 = arith.constant 0 : i32
    return %c0_i32, %c0_i32_0 : i32, i32
  }
  func.func @transform_4(%arg0: i32) -> (i32, i32) {
    %c0_i32 = arith.constant 0 : i32
    %c0_i32_0 = arith.constant 0 : i32
    %c0_i32_1 = arith.constant 0 : i32
    return %c0_i32, %c0_i32_0 : i32, i32
  }
  func.func @transform_5(%arg0: i32) -> (i32, i32) {
    %c0_i32 = arith.constant 0 : i32
    %c0_i32_0 = arith.constant 0 : i32
    %c0_i32_1 = arith.constant 0 : i32
    return %c0_i32, %c0_i32_0 : i32, i32
  }
  func.func @transform_6(%arg0: i32) -> (i32, i32) {
    %c0_i32 = arith.constant 0 : i32
    %c0_i32_0 = arith.constant 0 : i32
    %c0_i32_1 = arith.constant 0 : i32
    return %c0_i32, %c0_i32_0 : i32, i32
  }
  func.func @transform_7(%arg0: i32) -> (i32, i32) {
    %c0_i32 = arith.constant 0 : i32
    %c0_i32_0 = arith.constant 0 : i32
    %c0_i32_1 = arith.constant 0 : i32
    return %c0_i32, %c0_i32_0 : i32, i32
  }
  func.func @transform_8(%arg0: i32) -> (i32, i32) {
    %c0_i32 = arith.constant 0 : i32
    %c0_i32_0 = arith.constant 0 : i32
    %c0_i32_1 = arith.constant 0 : i32
    return %c0_i32, %c0_i32_0 : i32, i32
  }
  func.func @transform_9(%arg0: i32) -> (i32, i32) {
    %c0_i32 = arith.constant 0 : i32
    %c0_i32_0 = arith.constant 0 : i32
    return %arg0, %c0_i32 : i32, i32
  }
}

module attributes {stable_mosaic.version = 11 : i64} {
  func.func @_mlp_kernel(%arg0: i32, %arg1: memref<8x32xf32, #tpu.memory_space<vmem>>, %arg2: memref<32x128xf32, #tpu.memory_space<vmem>>, %arg3: memref<1x128xf32, #tpu.memory_space<vmem>>, %arg4: memref<128x128xf32, #tpu.memory_space<vmem>>, %arg5: memref<1x128xf32, #tpu.memory_space<vmem>>, %arg6: memref<128x128xf32, #tpu.memory_space<vmem>>, %arg7: memref<1x128xf32, #tpu.memory_space<vmem>>, %arg8: memref<128x128xf32, #tpu.memory_space<vmem>>, %arg9: memref<1x128xf32, #tpu.memory_space<vmem>>, %arg10: memref<8x128xf32, #tpu.memory_space<vmem>>) attributes {dimension_semantics = [#tpu.dimension_semantics<parallel>], iteration_bounds = array<i64: 1>, scalar_prefetch = 0 : i64, scratch_operands = 0 : i64, tpu.core_type = #tpu.core_type<tc>, window_params = [{transform_indices = @transform_0, window_bounds = array<i64: 8, 32>}, {pipeline_mode = #tpu.pipeline_mode<synchronous>, transform_indices = @transform_1, window_bounds = array<i64: 32, 128>}, {pipeline_mode = #tpu.pipeline_mode<synchronous>, transform_indices = @transform_2, window_bounds = array<i64: 1, 128>}, {pipeline_mode = #tpu.pipeline_mode<synchronous>, transform_indices = @transform_3, window_bounds = array<i64: 128, 128>}, {pipeline_mode = #tpu.pipeline_mode<synchronous>, transform_indices = @transform_4, window_bounds = array<i64: 1, 128>}, {pipeline_mode = #tpu.pipeline_mode<synchronous>, transform_indices = @transform_5, window_bounds = array<i64: 128, 128>}, {pipeline_mode = #tpu.pipeline_mode<synchronous>, transform_indices = @transform_6, window_bounds = array<i64: 1, 128>}, {pipeline_mode = #tpu.pipeline_mode<synchronous>, transform_indices = @transform_7, window_bounds = array<i64: 128, 128>}, {pipeline_mode = #tpu.pipeline_mode<synchronous>, transform_indices = @transform_8, window_bounds = array<i64: 1, 128>}, {transform_indices = @transform_9, window_bounds = array<i64: 8, 128>}]} {
    %c0 = arith.constant 0 : index
    %c0_0 = arith.constant 0 : index
    %0 = vector.load %arg1[%c0, %c0_0] : memref<8x32xf32, #tpu.memory_space<vmem>>, vector<8x32xf32>
    %c0_1 = arith.constant 0 : index
    %c0_2 = arith.constant 0 : index
    %1 = vector.load %arg2[%c0_1, %c0_2] : memref<32x128xf32, #tpu.memory_space<vmem>>, vector<32x128xf32>
    %c0_3 = arith.constant 0 : index
    %c0_4 = arith.constant 0 : index
    %2 = vector.load %arg3[%c0_3, %c0_4] : memref<1x128xf32, #tpu.memory_space<vmem>>, vector<1x128xf32>
    %cst = arith.constant dense<0.000000e+00> : vector<8x128xf32>
    %3 = tpu.matmul %0, %1, %cst {dimension_numbers = #tpu.dot_dimension_numbers<[1], [0], [0], [1], [0, 0, 1, 1], [], []>} : vector<8x32xf32>, vector<32x128xf32>, vector<8x128xf32> -> vector<8x128xf32>
    %4 = vector.broadcast %2 : vector<1x128xf32> to vector<8x128xf32>
    %5 = arith.addf %3, %4 : vector<8x128xf32>
    %cst_5 = arith.constant 0.000000e+00 : f32
    %6 = vector.broadcast %cst_5 : f32 to vector<8x128xf32>
    %7 = arith.maximumf %5, %6 : vector<8x128xf32>
    %c0_6 = arith.constant 0 : index
    %c0_7 = arith.constant 0 : index
    %8 = vector.load %arg4[%c0_6, %c0_7] : memref<128x128xf32, #tpu.memory_space<vmem>>, vector<128x128xf32>
    %c0_8 = arith.constant 0 : index
    %c0_9 = arith.constant 0 : index
    %9 = vector.load %arg5[%c0_8, %c0_9] : memref<1x128xf32, #tpu.memory_space<vmem>>, vector<1x128xf32>
    %cst_10 = arith.constant dense<0.000000e+00> : vector<8x128xf32>
    %10 = tpu.matmul %7, %8, %cst_10 {dimension_numbers = #tpu.dot_dimension_numbers<[1], [0], [0], [1], [0, 0, 1, 1], [], []>} : vector<8x128xf32>, vector<128x128xf32>, vector<8x128xf32> -> vector<8x128xf32>
    %11 = vector.broadcast %9 : vector<1x128xf32> to vector<8x128xf32>
    %12 = arith.addf %10, %11 : vector<8x128xf32>
    %cst_11 = arith.constant 0.000000e+00 : f32
    %13 = vector.broadcast %cst_11 : f32 to vector<8x128xf32>
    %14 = arith.maximumf %12, %13 : vector<8x128xf32>
    %c0_12 = arith.constant 0 : index
    %c0_13 = arith.constant 0 : index
    %15 = vector.load %arg6[%c0_12, %c0_13] : memref<128x128xf32, #tpu.memory_space<vmem>>, vector<128x128xf32>
    %c0_14 = arith.constant 0 : index
    %c0_15 = arith.constant 0 : index
    %16 = vector.load %arg7[%c0_14, %c0_15] : memref<1x128xf32, #tpu.memory_space<vmem>>, vector<1x128xf32>
    %cst_16 = arith.constant dense<0.000000e+00> : vector<8x128xf32>
    %17 = tpu.matmul %14, %15, %cst_16 {dimension_numbers = #tpu.dot_dimension_numbers<[1], [0], [0], [1], [0, 0, 1, 1], [], []>} : vector<8x128xf32>, vector<128x128xf32>, vector<8x128xf32> -> vector<8x128xf32>
    %18 = vector.broadcast %16 : vector<1x128xf32> to vector<8x128xf32>
    %19 = arith.addf %17, %18 : vector<8x128xf32>
    %cst_17 = arith.constant 0.000000e+00 : f32
    %20 = vector.broadcast %cst_17 : f32 to vector<8x128xf32>
    %21 = arith.maximumf %19, %20 : vector<8x128xf32>
    %c0_18 = arith.constant 0 : index
    %c0_19 = arith.constant 0 : index
    %22 = vector.load %arg8[%c0_18, %c0_19] : memref<128x128xf32, #tpu.memory_space<vmem>>, vector<128x128xf32>
    %c0_20 = arith.constant 0 : index
    %c0_21 = arith.constant 0 : index
    %23 = vector.load %arg9[%c0_20, %c0_21] : memref<1x128xf32, #tpu.memory_space<vmem>>, vector<1x128xf32>
    %cst_22 = arith.constant dense<0.000000e+00> : vector<8x128xf32>
    %24 = tpu.matmul %21, %22, %cst_22 {dimension_numbers = #tpu.dot_dimension_numbers<[1], [0], [0], [1], [0, 0, 1, 1], [], []>} : vector<8x128xf32>, vector<128x128xf32>, vector<8x128xf32> -> vector<8x128xf32>
    %25 = vector.broadcast %23 : vector<1x128xf32> to vector<8x128xf32>
    %26 = arith.addf %24, %25 : vector<8x128xf32>
    %27 = arith.negf %26 : vector<8x128xf32>
    %28 = math.exp %27 : vector<8x128xf32>
    %cst_23 = arith.constant 1.000000e+00 : f32
    %29 = vector.broadcast %cst_23 : f32 to vector<8x128xf32>
    %30 = arith.addf %29, %28 : vector<8x128xf32>
    %31 = arith.divf %29, %30 : vector<8x128xf32>
    %c0_24 = arith.constant 0 : index
    %c0_25 = arith.constant 0 : index
    %32 = vector.load %arg10[%c0_24, %c0_25] : memref<8x128xf32, #tpu.memory_space<vmem>>, vector<8x128xf32>
    tpu.vector_store %arg10[%c0_24, %c0_25], %31 {strides = array<i32>} : memref<8x128xf32, #tpu.memory_space<vmem>>, vector<8x128xf32>,
    return
  }
  func.func @transform_0(%arg0: i32) -> (i32, i32) {
    %c0_i32 = arith.constant 0 : i32
    %c0_i32_0 = arith.constant 0 : i32
    return %arg0, %c0_i32 : i32, i32
  }
  func.func @transform_1(%arg0: i32) -> (i32, i32) {
    %c0_i32 = arith.constant 0 : i32
    %c0_i32_0 = arith.constant 0 : i32
    %c0_i32_1 = arith.constant 0 : i32
    return %c0_i32, %c0_i32_0 : i32, i32
  }
  func.func @transform_2(%arg0: i32) -> (i32, i32) {
    %c0_i32 = arith.constant 0 : i32
    %c0_i32_0 = arith.constant 0 : i32
    %c0_i32_1 = arith.constant 0 : i32
    return %c0_i32, %c0_i32_0 : i32, i32
  }
  func.func @transform_3(%arg0: i32) -> (i32, i32) {
    %c0_i32 = arith.constant 0 : i32
    %c0_i32_0 = arith.constant 0 : i32
    %c0_i32_1 = arith.constant 0 : i32
    return %c0_i32, %c0_i32_0 : i32, i32
  }
  func.func @transform_4(%arg0: i32) -> (i32, i32) {
    %c0_i32 = arith.constant 0 : i32
    %c0_i32_0 = arith.constant 0 : i32
    %c0_i32_1 = arith.constant 0 : i32
    return %c0_i32, %c0_i32_0 : i32, i32
  }
  func.func @transform_5(%arg0: i32) -> (i32, i32) {
    %c0_i32 = arith.constant 0 : i32
    %c0_i32_0 = arith.constant 0 : i32
    %c0_i32_1 = arith.constant 0 : i32
    return %c0_i32, %c0_i32_0 : i32, i32
  }
  func.func @transform_6(%arg0: i32) -> (i32, i32) {
    %c0_i32 = arith.constant 0 : i32
    %c0_i32_0 = arith.constant 0 : i32
    %c0_i32_1 = arith.constant 0 : i32
    return %c0_i32, %c0_i32_0 : i32, i32
  }
  func.func @transform_7(%arg0: i32) -> (i32, i32) {
    %c0_i32 = arith.constant 0 : i32
    %c0_i32_0 = arith.constant 0 : i32
    %c0_i32_1 = arith.constant 0 : i32
    return %c0_i32, %c0_i32_0 : i32, i32
  }
  func.func @transform_8(%arg0: i32) -> (i32, i32) {
    %c0_i32 = arith.constant 0 : i32
    %c0_i32_0 = arith.constant 0 : i32
    %c0_i32_1 = arith.constant 0 : i32
    return %c0_i32, %c0_i32_0 : i32, i32
  }
  func.func @transform_9(%arg0: i32) -> (i32, i32) {
    %c0_i32 = arith.constant 0 : i32
    %c0_i32_0 = arith.constant 0 : i32
    return %arg0, %c0_i32 : i32, i32
  }
}

</mosaic_0001>

<bundles_post_ra>
// kernel: tpu_custom_call.1
= control target key start
LH: loop header
LB: loop body
LE: loop exit
PB: predicated region body
PF: predicated region fallthrough
CT: control target
= control target key end

     0   :  { %14 = vsyncpa [#allocation3], 0  ;;  %s1093_s0 = inlined_call_operand.hbm [shape: f32[8,32], index: 0, kind: input, shape index: {}]   ;;  %s1094_s1 = inlined_call_operand.hbm [shape: f32[32,128], index: 1, kind: input, shape index: {}]   ;;  %s1095_s2 = inlined_call_operand.vmem [shape: f32[1,128], index: 2, kind: input, shape index: {}]   ;;  %s1096_s3 = inlined_call_operand.hbm [shape: f32[128,128], index: 3, kind: input, shape index: {}]   ;;  %s1097_s4 = inlined_call_operand.vmem [shape: f32[1,128], index: 4, kind: input, shape index: {}]   ;;  %s1098_s5 = inlined_call_operand.hbm [shape: f32[128,128], index: 5, kind: input, shape index: {}]   ;;  %s1099_s6 = inlined_call_operand.vmem [shape: f32[1,128], index: 6, kind: input, shape index: {}]   ;;  %s1100_s7 = inlined_call_operand.hbm [shape: f32[128,128], index: 7, kind: input, shape index: {}]   ;;  %s1101_s8 = inlined_call_operand.vmem [shape: f32[1,128], index: 8, kind: input, shape index: {}]   ;;  %s1102_s9 = inlined_call_operand.hbm [shape: f32[8,128], index: 9, kind: output, shape index: {}]  }
   0x1   :  { %15 = vsyncpa [#allocation6], 0 }
   0x2   :  { %16 = vsyncpa [#allocation9], 0 }
   0x3   :  { %17 = vsyncpa [#allocation4], 0  ;;  %s902_s30 = smov [#allocation5]   ;;  %s762_s13 = scalar_lea.hbm %s1094_s1, 512 }
   0x4   :  { %s33_s10 = sshll.u32 %s902_s30, 4  ;;  %p763_p0 = scmp.ne.s32.totalorder %s1094_s1, %s762_s13  ;;  %s34_s10 = int_to_ptr.vmem [resolvable:$true] %s33_s10 }
   0x5   :  { %p766_p1 = scmp.lt.u32.totalorder %s762_s13, %s1094_s1 }
   0x7   :  { %p768_p2 = pnand %p766_p1, %p763_p0 }
   0x9   :  { %771 = shalt.err (!%p768_p2)
}
   0xa   :  { %s772_s18 = scalar_lea.vmem %s34_s10, 512  ;;  %p777_p4 = scmp.lt.s32.totalorder %s34_s10, %s34_s10 }
   0xb   :  { %p773_p3 = scmp.ne.s32.totalorder %s34_s10, %s772_s18  ;;  %p778_p5 = scmp.lt.s32.totalorder %s772_s18, %s772_s18 }
   0xd   :  { %p779_p6 = por %p778_p5, %p777_p4 }
   0xf   :  { %p780_p7 = pnand %p779_p6, %p773_p3 }
  0x11   :  { %783 = shalt.err (!%p780_p7)
}
  0x12   :  { %s903_s19 = smov 128   ;;  %s904_s20 = smov 8  }
  0x13   :  { %39 = dma.hbm_to_vmem [thread:$0]  %s1094_s1, 512, %s34_s10, [#allocation6], %s903_s19, %s903_s19, %s904_s20  }
  0x14   :  { %s905_s23 = smov [#allocation8]   ;;  %s906_s25 = smov [#allocation2]  }
  0x15   :  { %s61_s24 = sshll.u32 %s905_s23, 4  ;;  %s24_s26 = sshll.u32 %s906_s25, 4  ;;  %s62_s24 = int_to_ptr.vmem [resolvable:$true] %s61_s24  ;;  %s25_s26 = int_to_ptr.vmem [resolvable:$true] %s24_s26 }
  0x16   :  { %s784_s29 = scalar_lea.hbm %s1098_s5, 2048 }
  0x17   :  { %p785_p8 = scmp.ne.s32.totalorder %s1098_s5, %s784_s29  ;;  %p788_p9 = scmp.lt.u32.totalorder %s784_s29, %s1098_s5 }
  0x19   :  { %p790_p10 = pnand %p788_p9, %p785_p8 }
  0x1b   :  { %793 = shalt.err (!%p790_p10)
}
  0x1c   :  { %s794_s1 = scalar_lea.vmem %s62_s24, 2048  ;;  %p799_p12 = scmp.lt.s32.totalorder %s62_s24, %s62_s24 }
  0x1d   :  { %p795_p11 = scmp.ne.s32.totalorder %s62_s24, %s794_s1  ;;  %p800_p13 = scmp.lt.s32.totalorder %s794_s1, %s794_s1 }
  0x1f   :  { %p801_p0 = por %p800_p13, %p799_p12 }
  0x21   :  { %p802_p1 = pnand %p801_p0, %p795_p11 }
  0x23   :  { %805 = shalt.err (!%p802_p1)
}
  0x24   :  { %67 = dma.hbm_to_vmem [thread:$0]  %s1098_s5, 2048, %s62_s24, [#allocation9], %s903_s19, %s903_s19, %s904_s20  }
  0x25   :  { %s806_s17 = scalar_lea.hbm %s1093_s0, 128 }
  0x26   :  { %p807_p2 = scmp.ne.s32.totalorder %s1093_s0, %s806_s17  ;;  %p810_p3 = scmp.lt.u32.totalorder %s806_s17, %s1093_s0 }
  0x28   :  { %p812_p4 = pnand %p810_p3, %p807_p2 }
  0x2a   :  { %815 = shalt.err (!%p812_p4)
}
  0x2b   :  { %s816_s25 = scalar_lea.vmem %s25_s26, 128  ;;  %p821_p6 = scmp.lt.s32.totalorder %s25_s26, %s25_s26 }
  0x2c   :  { %p817_p5 = scmp.ne.s32.totalorder %s25_s26, %s816_s25  ;;  %p822_p7 = scmp.lt.s32.totalorder %s816_s25, %s816_s25 }
  0x2e   :  { %p823_p8 = por %p822_p7, %p821_p6 }
  0x30   :  { %p824_p9 = pnand %p823_p8, %p817_p5 }
  0x32   :  { %827 = shalt.err (!%p824_p9)
}
  0x33   :  { %27 = dma.hbm_to_vmem [thread:$0]  %s1093_s0, 128, %s25_s26, [#allocation3]  }
  0x34   :  { %s907_s27 = smov [#allocation7]   ;;  %s908_s29 = smov [#allocation10]  }
  0x35   :  { %s47_s28 = sshll.u32 %s907_s27, 4  ;;  %s75_s30 = sshll.u32 %s908_s29, 4  ;;  %s48_s28 = int_to_ptr.vmem [resolvable:$true] %s47_s28  ;;  %s76_s30 = int_to_ptr.vmem [resolvable:$true] %s75_s30 }
  0x36   :  { %s828_s13 = scalar_lea.hbm %s1096_s3, 2048 }
  0x37   :  { %p829_p10 = scmp.ne.s32.totalorder %s1096_s3, %s828_s13  ;;  %p832_p11 = scmp.lt.u32.totalorder %s828_s13, %s1096_s3 }
  0x39   :  { %p834_p12 = pnand %p832_p11, %p829_p10 }
  0x3b   :  { %837 = shalt.err (!%p834_p12)
}
  0x3c   :  { %s838_s0 = scalar_lea.vmem %s48_s28, 2048  ;;  %p843_p0 = scmp.lt.s32.totalorder %s48_s28, %s48_s28 }
  0x3d   :  { %p839_p13 = scmp.ne.s32.totalorder %s48_s28, %s838_s0  ;;  %p844_p1 = scmp.lt.s32.totalorder %s838_s0, %s838_s0 }
  0x3f   :  { %p845_p2 = por %p844_p1, %p843_p0 }
  0x41   :  { %p846_p3 = pnand %p845_p2, %p839_p13 }
  0x43   :  { %849 = shalt.err (!%p846_p3)
}
  0x44   :  { %53 = dma.hbm_to_vmem [thread:$0]  %s1096_s3, 2048, %s48_s28, [#allocation6], %s903_s19, %s903_s19, %s904_s20  }
  0x45   :  { %s850_s21 = scalar_lea.hbm %s1100_s7, 2048 }
  0x46   :  { %p851_p4 = scmp.ne.s32.totalorder %s1100_s7, %s850_s21  ;;  %p854_p5 = scmp.lt.u32.totalorder %s850_s21, %s1100_s7 }
  0x48   :  { %p856_p6 = pnand %p854_p5, %p851_p4 }
  0x4a   :  { %859 = shalt.err (!%p856_p6)
}
  0x4b   :  { %s860_s24 = scalar_lea.vmem %s76_s30, 2048  ;;  %p865_p8 = scmp.lt.s32.totalorder %s76_s30, %s76_s30 }
  0x4c   :  { %p861_p7 = scmp.ne.s32.totalorder %s76_s30, %s860_s24  ;;  %p866_p9 = scmp.lt.s32.totalorder %s860_s24, %s860_s24 }
  0x4e   :  { %p867_p10 = por %p866_p9, %p865_p8 }
  0x50   :  { %p868_p11 = pnand %p867_p10, %p861_p7 }
  0x52   :  { %871 = shalt.err (!%p868_p11)
}
  0x53   :  { %81 = dma.hbm_to_vmem [thread:$0]  %s1100_s7, 2048, %s76_s30, [#allocation9], %s903_s19, %s903_s19, %s904_s20  }
  0x54   :  { %894 = dma.done.wait [#allocation3], 128  }
  0x55   :  { %895 = vsyncadd [#allocation3], 4294967168 }
  0x56   :  { %896 = dma.done.wait [#allocation6], 2560  }
  0x57   :  { %897 = vsyncadd [#allocation6], 4294964736 }
  0x58   :  { %898 = dma.done.wait [#allocation9], 4096  }
  0x59   :  { %899 = vsyncadd [#allocation9], 4294963200  ;;  %v909_v0 = vmov 0.0|0.0   ;;  %vm910_vm0 = vmmov 0   ;;  %v911_v1 = vmov 0.0   ;;  %v100_v2 = vld [vmem:[#allocation5] sm:$0xff] }
  0x5a   :  { %669 = vmatprep.subr.bf16.mxu0 %v909_v0  ;;  %561 = vmatprep.mubr.msk.f32.mxu0 %vm910_vm0, %v911_v1  ;;  %v101_v3 = vld [vmem:[#allocation5 + $0x8] sm:$0xff]  ;;  %v102_v4 = vld [vmem:[#allocation5 + $0x10] sm:$0xff]  ;;  %v103_v6 = vld [vmem:[#allocation5 + $0x18] sm:$0xff]  ;;  %vm111_vm1 = vcmask 261120   ;;  %s912_s11 = smov [#allocation11]  }
  0x5b   :  { %675 = vmatprep.subr.bf16.mxu1 %v909_v0  ;;  %596 = vmatprep.mubr.msk.f32.mxu1 %vm910_vm0, %v911_v1  ;;  %v670_v5 = vpack.c.bf16 %v101_v3, %v100_v2  ;;  %v186_v7 = vld [vmem:[#allocation7] sm:$0xff]  ;;  %v187_v8 = vld [vmem:[#allocation7 + $0x8] sm:$0xff]  ;;  %v188_v9 = vld [vmem:[#allocation7 + $0x10] sm:$0xff]  ;;  %v673_v11 = vpack.c.bf16 %v103_v6, %v102_v4  ;;  %s480_s12 = sshll.u32 %s912_s11, 4  ;;  %s481_s12 = int_to_ptr.vmem [resolvable:$true] %s480_s12 }
  0x5c   :  { %v189_v10 = vld [vmem:[#allocation7 + $0x18] sm:$0xff]  ;;  %v676_v12 = vpack.c.bf16 %v187_v8, %v186_v7  ;;  %v190_v14 = vld [vmem:[#allocation7 + $0x20] sm:$0xff]  ;;  %v191_v15 = vld [vmem:[#allocation7 + $0x28] sm:$0xff]  ;;  %p877_p13 = scmp.lt.s32.totalorder %s481_s12, %s481_s12 }
  0x5d   :  { %671 = vmatpush3.bf16.msra.mxu0 %v670_v5  ;;  %v679_v13 = vpack.c.bf16 %v189_v10, %v188_v9  ;;  %v99_v16 = vld [vmem:[#allocation2] sm:$0xff]  ;;  %v682_v17 = vpack.c.bf16 %v191_v15, %v190_v14  ;;  %v192_v18 = vld [vmem:[#allocation7 + $0x30] sm:$0xff]  ;;  %v194_v21 = vld [vmem:[#allocation7 + $0x40] sm:$0xff] }
  0x5e   :  { %672 = vmatprep.subr.bf16.mxu0 %v909_v0  ;;  %677 = vmatpush3.bf16.msra.mxu1 %v676_v12  ;;  %v193_v19 = vld [vmem:[#allocation7 + $0x38] sm:$0xff]  ;;  %v195_v22 = vld [vmem:[#allocation7 + $0x48] sm:$0xff]  ;;  %v196_v24 = vld [vmem:[#allocation7 + $0x50] sm:$0xff] }
  0x5f   :  { %678 = vmatprep.subr.bf16.mxu1 %v909_v0  ;;  %v685_v20 = vpack.c.bf16 %v193_v19, %v192_v18  ;;  %v688_v23 = vpack.c.bf16 %v195_v22, %v194_v21  ;;  %v197_v25 = vld [vmem:[#allocation7 + $0x58] sm:$0xff]  ;;  %v198_v27 = vld [vmem:[#allocation7 + $0x60] sm:$0xff]  ;;  %v199_v28 = vld [vmem:[#allocation7 + $0x68] sm:$0xff] }
  0x60   :  { %v691_v26 = vpack.c.bf16 %v197_v25, %v196_v24  ;;  %v694_v29 = vpack.c.bf16 %v199_v28, %v198_v27  ;;  %v200_v30 = vld [vmem:[#allocation7 + $0x70] sm:$0xff]  ;;  %v201_v31 = vld [vmem:[#allocation7 + $0x78] sm:$0xff]  ;;  %v280_v33 = vld [vmem:[#allocation8] sm:$0xff] }
  0x61   :  { %674 = vmatpush3.bf16.msra.mxu0 %v673_v11  ;;  %v697_v32 = vpack.c.bf16 %v201_v31, %v200_v30  ;;  %v281_v34 = vld [vmem:[#allocation8 + $0x8] sm:$0xff]  ;;  %v282_v35 = vld [vmem:[#allocation8 + $0x10] sm:$0xff]  ;;  %v283_v37 = vld [vmem:[#allocation8 + $0x18] sm:$0xff] }
  0x62   :  { %699 = vmatprep.subr.bf16.mxu0 %v909_v0  ;;  %680 = vmatpush3.bf16.msra.mxu1 %v679_v13  ;;  %v700_v36 = vpack.c.bf16 %v281_v34, %v280_v33  ;;  %v703_v38 = vpack.c.bf16 %v283_v37, %v282_v35  ;;  %v284_v39 = vld [vmem:[#allocation8 + $0x20] sm:$0xff]  ;;  %v285_v40 = vld [vmem:[#allocation8 + $0x28] sm:$0xff]  ;;  %v286_v42 = vld [vmem:[#allocation8 + $0x30] sm:$0xff] }
  0x63   :  { %681 = vmatprep.subr.bf16.mxu1 %v909_v0  ;;  %v706_v41 = vpack.c.bf16 %v285_v40, %v284_v39  ;;  %v287_v43 = vld [vmem:[#allocation8 + $0x38] sm:$0xff]  ;;  %v288_v45 = vld [vmem:[#allocation8 + $0x40] sm:$0xff]  ;;  %v289_v46 = vld [vmem:[#allocation8 + $0x48] sm:$0xff] }
  0x64   :  { %562 = vmatmul.mubr.msk.f32.vlgmr.msra.gmra.mrb[0].mxu0 %vm111_vm1, %v99_v16  ;;  %v709_v44 = vpack.c.bf16 %v287_v43, %v286_v42  ;;  %v712_v47 = vpack.c.bf16 %v289_v46, %v288_v45  ;;  %v290_v48 = vld [vmem:[#allocation8 + $0x50] sm:$0xff]  ;;  %v291_v49 = vld [vmem:[#allocation8 + $0x58] sm:$0xff]  ;;  %v292_v51 = vld [vmem:[#allocation8 + $0x60] sm:$0xff] }
  0x65   :  { %631 = vmatprep.mubr.msk.f32.mxu0 %vm910_vm0, %v911_v1  ;;  %701 = vmatpush3.bf16.msra.mxu0 %v700_v36  ;;  %v715_v50 = vpack.c.bf16 %v291_v49, %v290_v48  ;;  %v293_v52 = vld [vmem:[#allocation8 + $0x68] sm:$0xff]  ;;  %v491_v54 = vld [vmem:[%s1095_s2] ss:$0 sm:$0xff]  ;;  %v294_v59 = vld [vmem:[#allocation8 + $0x70] sm:$0xff] }
  0x66   :  { %683 = vmatpush3.bf16.msra.mxu1 %v682_v17  ;;  %702 = vmatprep.subr.bf16.mxu0 %v909_v0  ;;  %v718_v53 = vpack.c.bf16 %v293_v52, %v292_v51  ;;  %v295_v60 = vld [vmem:[#allocation8 + $0x78] sm:$0xff]  ;;  %v374_v62 = vld [vmem:[#allocation10] sm:$0xff]  ;;  %v375_v63 = vld [vmem:[#allocation10 + $0x8] sm:$0xff] }
  0x67   :  { %684 = vmatprep.subr.bf16.mxu1 %v909_v0  ;;  %v721_v61 = vpack.c.bf16 %v295_v60, %v294_v59  ;;  %v376_v2 = vld [vmem:[#allocation10 + $0x10] sm:$0xff]  ;;  %v724_v3 = vpack.c.bf16 %v375_v63, %v374_v62  ;;  %v377_v4 = vld [vmem:[#allocation10 + $0x18] sm:$0xff]  ;;  %v378_v6 = vld [vmem:[#allocation10 + $0x20] sm:$0xff] }
  0x68   :  { %v727_v5 = vpack.c.bf16 %v377_v4, %v376_v2  ;;  %v379_v7 = vld [vmem:[#allocation10 + $0x28] sm:$0xff]  ;;  %v381_v9 = vld [vmem:[#allocation10 + $0x38] sm:$0xff]  ;;  %v382_v11 = vld [vmem:[#allocation10 + $0x40] sm:$0xff] }
  0x69   :  { %704 = vmatpush3.bf16.msra.mxu0 %v703_v38  ;;  %v730_v8 = vpack.c.bf16 %v379_v7, %v378_v6  ;;  %v383_v12 = vld [vmem:[#allocation10 + $0x48] sm:$0xff]  ;;  %v384_v14 = vld [vmem:[#allocation10 + $0x50] sm:$0xff]  ;;  %v385_v15 = vld [vmem:[#allocation10 + $0x58] sm:$0xff] }
  0x6a   :  { %686 = vmatpush3.bf16.msra.mxu1 %v685_v20  ;;  %705 = vmatprep.subr.bf16.mxu0 %v909_v0  ;;  %v736_v13 = vpack.c.bf16 %v383_v12, %v382_v11  ;;  %v739_v16 = vpack.c.bf16 %v385_v15, %v384_v14  ;;  %v386_v17 = vld [vmem:[#allocation10 + $0x60] sm:$0xff]  ;;  %v387_v18 = vld [vmem:[#allocation10 + $0x68] sm:$0xff]  ;;  %v493_v20 = vld [vmem:[%s1097_s4] ss:$0 sm:$0xff] }
  0x6b   :  { %687 = vmatprep.subr.bf16.mxu1 %v909_v0  ;;  %v742_v19 = vpack.c.bf16 %v387_v18, %v386_v17  ;;  %v388_v25 = vld [vmem:[#allocation10 + $0x70] sm:$0xff]  ;;  %v494_v28 = vld [vmem:[%s1099_s6] ss:$0 sm:$0xff]  ;;  %s872_s6 = scalar_lea.vmem %s481_s12, 128 }
  0x6c   :  { %p873_p12 = scmp.ne.s32.totalorder %s481_s12, %s872_s6  ;;  %p878_p0 = scmp.lt.s32.totalorder %s872_s6, %s872_s6 }
  0x6d   :  { %707 = vmatpush3.bf16.msra.mxu0 %v706_v41 }
  0x6e   :  { %689 = vmatpush3.bf16.msra.mxu1 %v688_v23  ;;  %708 = vmatprep.subr.bf16.mxu0 %v909_v0  ;;  %p879_p1 = por %p878_p0, %p877_p13 }
  0x6f   :  { %690 = vmatprep.subr.bf16.mxu1 %v909_v0 }
  0x70   :  { %p880_p2 = pnand %p879_p1, %p873_p12 }
  0x71   :  { %710 = vmatpush3.bf16.msra.mxu0 %v709_v44 }
  0x72   :  { %692 = vmatpush3.bf16.msra.mxu1 %v691_v26  ;;  %711 = vmatprep.subr.bf16.mxu0 %v909_v0  ;;  %v389_v26 = vld [vmem:[#allocation10 + $0x78] sm:$0xff] }
  0x73   :  { %693 = vmatprep.subr.bf16.mxu1 %v909_v0  ;;  %v745_v27 = vpack.c.bf16 %v389_v26, %v388_v25 }
  0x75   :  { %713 = vmatpush3.bf16.msra.mxu0 %v712_v47 }
  0x76   :  { %695 = vmatpush3.bf16.msra.mxu1 %v694_v29  ;;  %714 = vmatprep.subr.bf16.mxu0 %v909_v0 }
  0x77   :  { %696 = vmatprep.subr.bf16.mxu1 %v909_v0 }
  0x79   :  { %716 = vmatpush3.bf16.msra.mxu0 %v715_v50 }
  0x7a   :  { %698 = vmatpush3.bf16.msra.mxu1 %v697_v32  ;;  %717 = vmatprep.subr.bf16.mxu0 %v909_v0  ;;  %v495_v32 = vld [vmem:[%s1101_s8] ss:$0 sm:$0xff] }
  0x7b   :  { %723 = vmatprep.subr.bf16.mxu1 %v909_v0 }
  0x7d   :  { %719 = vmatpush3.bf16.msra.mxu0 %v718_v53 }
  0x7e   :  { %720 = vmatprep.subr.bf16.mxu0 %v909_v0 }
  0x81   :  { %722 = vmatpush3.bf16.msra.mxu0 %v721_v61 }
 0x137   :  { %v181_v55 = vpop.f32.mrb[0].mxu0 }
 0x138   :  { %v182_v56 = vadd.f32 %v491_v54, %v181_v55  ;;  %v563_v57 = vpop.f32.mrb[1].mxu0 }
 0x13a   :  { %v185_v58 = vmax.f32 %v182_v56, 0.0 }
 0x13c   :  { %597 = vmatmul.mubr.f32.vlgmr.msra.gmra.mrb[0].mxu1 %v185_v58 }
 0x13d   :  { %666 = vmatprep.mubr.msk.f32.mxu1 %vm910_vm0, %v911_v1  ;;  %725 = vmatpush3.bf16.msra.mxu1 %v724_v3  ;;  %v380_v1 = vld [vmem:[#allocation10 + $0x30] sm:$0xff] }
 0x13e   :  { %726 = vmatprep.subr.bf16.mxu1 %v909_v0  ;;  %v733_v10 = vpack.c.bf16 %v381_v9, %v380_v1 }
 0x141   :  { %728 = vmatpush3.bf16.msra.mxu1 %v727_v5 }
 0x142   :  { %729 = vmatprep.subr.bf16.mxu1 %v909_v0 }
 0x145   :  { %731 = vmatpush3.bf16.msra.mxu1 %v730_v8 }
 0x146   :  { %732 = vmatprep.subr.bf16.mxu1 %v909_v0 }
 0x149   :  { %734 = vmatpush3.bf16.msra.mxu1 %v733_v10 }
 0x14a   :  { %735 = vmatprep.subr.bf16.mxu1 %v909_v0 }
 0x14d   :  { %737 = vmatpush3.bf16.msra.mxu1 %v736_v13 }
 0x14e   :  { %738 = vmatprep.subr.bf16.mxu1 %v909_v0 }
 0x151   :  { %740 = vmatpush3.bf16.msra.mxu1 %v739_v16 }
 0x152   :  { %741 = vmatprep.subr.bf16.mxu1 %v909_v0 }
 0x155   :  { %743 = vmatpush3.bf16.msra.mxu1 %v742_v19 }
 0x156   :  { %744 = vmatprep.subr.bf16.mxu1 %v909_v0 }
 0x159   :  { %746 = vmatpush3.bf16.msra.mxu1 %v745_v27 }
 0x20f   :  { %v275_v21 = vpop.f32.mrb[0].mxu1 }
 0x210   :  { %v276_v22 = vadd.f32 %v493_v20, %v275_v21  ;;  %v598_v23 = vpop.f32.mrb[1].mxu1 }
 0x212   :  { %v279_v24 = vmax.f32 %v276_v22, 0.0 }
 0x214   :  { %632 = vmatmul.mubr.f32.vlgmr.msra.gmra.mrb[2].mxu0 %v279_v24 }
 0x2e7   :  { %v369_v29 = vpop.f32.mrb[2].mxu0 }
 0x2e8   :  { %v370_v30 = vadd.f32 %v494_v28, %v369_v29  ;;  %v633_v0 = vpop.f32.mrb[3].mxu0 }
 0x2ea   :  { %v373_v31 = vmax.f32 %v370_v30, 0.0 }
 0x2ec   :  { %667 = vmatmul.mubr.f32.vlgmr.msra.gmra.mrb[2].mxu1 %v373_v31 }
 0x3bf   :  { %v463_v33 = vpop.f32.mrb[2].mxu1 }
 0x3c0   :  { %v464_v34 = vadd.f32 %v495_v32, %v463_v33  ;;  %v668_v35 = vpop.f32.mrb[3].mxu1 }
 0x3c2   :  { %v496_v36 = vmul.f32 -1.442695, %v464_v34 }
 0x3c4   :  { %758 = vpow2.f32 %v496_v36 }
 0x3ce   :  { %v759_v37 = vpop.eup %758 }
 0x3cf   :  { %v470_v38 = vadd.f32 1.0, %v759_v37 }
 0x3d1   :  { %760 = vrcp.f32 %v470_v38 }
 0x3db   :  { %v761_v39 = vpop.eup %760 }
 0x3dc   :  { %473 = vst [vmem:[#allocation11] sm:$0xff] %v761_v39 }
 0x3dd   :  { %883 = shalt.err (!%p880_p2)
}
 0x3de   :  { %s884_s1 = scalar_lea.hbm %s1102_s9, 128 }
 0x3df   :  { %p885_p3 = scmp.ne.s32.totalorder %s1102_s9, %s884_s1  ;;  %p888_p4 = scmp.lt.u32.totalorder %s884_s1, %s1102_s9 }
 0x3e1   :  { %p890_p5 = pnand %p888_p4, %p885_p3 }
 0x3e3   :  { %893 = shalt.err (!%p890_p5)
}
 0x3e4   :  { %483 = dma.vmem_to_hbm [thread:$0]  %s481_s12, 128, %s1102_s9, [#allocation4]  }
 0x3e5   :  { %900 = dma.done.wait [#allocation4], 128  }
 0x3e6   :  { %901 = vsyncadd [#allocation4], 4294967168 }
 0x3e7   :  { %487 = vsyncpa [#allocation3], 1 }
 0x3e8   :  { %488 = vsyncpa [#allocation6], 1 }
 0x3e9   :  { %489 = vsyncpa [#allocation9], 1 }
 0x3ea   :  { %490 = vsyncpa [#allocation4], 1 }

// kernel: tpu_custom_call.1
= control target key start
LH: loop header
LB: loop body
LE: loop exit
PB: predicated region body
PF: predicated region fallthrough
CT: control target
= control target key end

     0   :  { %14 = vsyncpa [#allocation3], 0  ;;  %s1093_s0 = inlined_call_operand.hbm [shape: f32[8,32], index: 0, kind: input, shape index: {}]   ;;  %s1094_s1 = inlined_call_operand.hbm [shape: f32[32,128], index: 1, kind: input, shape index: {}]   ;;  %s1095_s2 = inlined_call_operand.vmem [shape: f32[1,128], index: 2, kind: input, shape index: {}]   ;;  %s1096_s3 = inlined_call_operand.hbm [shape: f32[128,128], index: 3, kind: input, shape index: {}]   ;;  %s1097_s4 = inlined_call_operand.vmem [shape: f32[1,128], index: 4, kind: input, shape index: {}]   ;;  %s1098_s5 = inlined_call_operand.hbm [shape: f32[128,128], index: 5, kind: input, shape index: {}]   ;;  %s1099_s6 = inlined_call_operand.vmem [shape: f32[1,128], index: 6, kind: input, shape index: {}]   ;;  %s1100_s7 = inlined_call_operand.hbm [shape: f32[128,128], index: 7, kind: input, shape index: {}]   ;;  %s1101_s8 = inlined_call_operand.vmem [shape: f32[1,128], index: 8, kind: input, shape index: {}]   ;;  %s1102_s9 = inlined_call_operand.hbm [shape: f32[8,128], index: 9, kind: output, shape index: {}]  }
   0x1   :  { %15 = vsyncpa [#allocation6], 0 }
   0x2   :  { %16 = vsyncpa [#allocation9], 0 }
   0x3   :  { %17 = vsyncpa [#allocation4], 0  ;;  %s902_s30 = smov [#allocation5]   ;;  %s762_s13 = scalar_lea.hbm %s1094_s1, 512 }
   0x4   :  { %s33_s10 = sshll.u32 %s902_s30, 4  ;;  %p763_p0 = scmp.ne.s32.totalorder %s1094_s1, %s762_s13  ;;  %s34_s10 = int_to_ptr.vmem [resolvable:$true] %s33_s10 }
   0x5   :  { %p766_p1 = scmp.lt.u32.totalorder %s762_s13, %s1094_s1 }
   0x7   :  { %p768_p2 = pnand %p766_p1, %p763_p0 }
   0x9   :  { %771 = shalt.err (!%p768_p2)
}
   0xa   :  { %s772_s18 = scalar_lea.vmem %s34_s10, 512  ;;  %p777_p4 = scmp.lt.s32.totalorder %s34_s10, %s34_s10 }
   0xb   :  { %p773_p3 = scmp.ne.s32.totalorder %s34_s10, %s772_s18  ;;  %p778_p5 = scmp.lt.s32.totalorder %s772_s18, %s772_s18 }
   0xd   :  { %p779_p6 = por %p778_p5, %p777_p4 }
   0xf   :  { %p780_p7 = pnand %p779_p6, %p773_p3 }
  0x11   :  { %783 = shalt.err (!%p780_p7)
}
  0x12   :  { %s903_s19 = smov 128   ;;  %s904_s20 = smov 8  }
  0x13   :  { %39 = dma.hbm_to_vmem [thread:$0]  %s1094_s1, 512, %s34_s10, [#allocation6], %s903_s19, %s903_s19, %s904_s20  }
  0x14   :  { %s905_s23 = smov [#allocation8]   ;;  %s906_s25 = smov [#allocation2]  }
  0x15   :  { %s61_s24 = sshll.u32 %s905_s23, 4  ;;  %s24_s26 = sshll.u32 %s906_s25, 4  ;;  %s62_s24 = int_to_ptr.vmem [resolvable:$true] %s61_s24  ;;  %s25_s26 = int_to_ptr.vmem [resolvable:$true] %s24_s26 }
  0x16   :  { %s784_s29 = scalar_lea.hbm %s1098_s5, 2048 }
  0x17   :  { %p785_p8 = scmp.ne.s32.totalorder %s1098_s5, %s784_s29  ;;  %p788_p9 = scmp.lt.u32.totalorder %s784_s29, %s1098_s5 }
  0x19   :  { %p790_p10 = pnand %p788_p9, %p785_p8 }
  0x1b   :  { %793 = shalt.err (!%p790_p10)
}
  0x1c   :  { %s794_s1 = scalar_lea.vmem %s62_s24, 2048  ;;  %p799_p12 = scmp.lt.s32.totalorder %s62_s24, %s62_s24 }
  0x1d   :  { %p795_p11 = scmp.ne.s32.totalorder %s62_s24, %s794_s1  ;;  %p800_p13 = scmp.lt.s32.totalorder %s794_s1, %s794_s1 }
  0x1f   :  { %p801_p0 = por %p800_p13, %p799_p12 }
  0x21   :  { %p802_p1 = pnand %p801_p0, %p795_p11 }
  0x23   :  { %805 = shalt.err (!%p802_p1)
}
  0x24   :  { %67 = dma.hbm_to_vmem [thread:$0]  %s1098_s5, 2048, %s62_s24, [#allocation9], %s903_s19, %s903_s19, %s904_s20  }
  0x25   :  { %s806_s17 = scalar_lea.hbm %s1093_s0, 128 }
  0x26   :  { %p807_p2 = scmp.ne.s32.totalorder %s1093_s0, %s806_s17  ;;  %p810_p3 = scmp.lt.u32.totalorder %s806_s17, %s1093_s0 }
  0x28   :  { %p812_p4 = pnand %p810_p3, %p807_p2 }
  0x2a   :  { %815 = shalt.err (!%p812_p4)
}
  0x2b   :  { %s816_s25 = scalar_lea.vmem %s25_s26, 128  ;;  %p821_p6 = scmp.lt.s32.totalorder %s25_s26, %s25_s26 }
  0x2c   :  { %p817_p5 = scmp.ne.s32.totalorder %s25_s26, %s816_s25  ;;  %p822_p7 = scmp.lt.s32.totalorder %s816_s25, %s816_s25 }
  0x2e   :  { %p823_p8 = por %p822_p7, %p821_p6 }
  0x30   :  { %p824_p9 = pnand %p823_p8, %p817_p5 }
  0x32   :  { %827 = shalt.err (!%p824_p9)
}
  0x33   :  { %27 = dma.hbm_to_vmem [thread:$0]  %s1093_s0, 128, %s25_s26, [#allocation3]  }
  0x34   :  { %s907_s27 = smov [#allocation7]   ;;  %s908_s29 = smov [#allocation10]  }
  0x35   :  { %s47_s28 = sshll.u32 %s907_s27, 4  ;;  %s75_s30 = sshll.u32 %s908_s29, 4  ;;  %s48_s28 = int_to_ptr.vmem [resolvable:$true] %s47_s28  ;;  %s76_s30 = int_to_ptr.vmem [resolvable:$true] %s75_s30 }
  0x36   :  { %s828_s13 = scalar_lea.hbm %s1096_s3, 2048 }
  0x37   :  { %p829_p10 = scmp.ne.s32.totalorder %s1096_s3, %s828_s13  ;;  %p832_p11 = scmp.lt.u32.totalorder %s828_s13, %s1096_s3 }
  0x39   :  { %p834_p12 = pnand %p832_p11, %p829_p10 }
  0x3b   :  { %837 = shalt.err (!%p834_p12)
}
  0x3c   :  { %s838_s0 = scalar_lea.vmem %s48_s28, 2048  ;;  %p843_p0 = scmp.lt.s32.totalorder %s48_s28, %s48_s28 }
  0x3d   :  { %p839_p13 = scmp.ne.s32.totalorder %s48_s28, %s838_s0  ;;  %p844_p1 = scmp.lt.s32.totalorder %s838_s0, %s838_s0 }
  0x3f   :  { %p845_p2 = por %p844_p1, %p843_p0 }
  0x41   :  { %p846_p3 = pnand %p845_p2, %p839_p13 }
  0x43   :  { %849 = shalt.err (!%p846_p3)
}
  0x44   :  { %53 = dma.hbm_to_vmem [thread:$0]  %s1096_s3, 2048, %s48_s28, [#allocation6], %s903_s19, %s903_s19, %s904_s20  }
  0x45   :  { %s850_s21 = scalar_lea.hbm %s1100_s7, 2048 }
  0x46   :  { %p851_p4 = scmp.ne.s32.totalorder %s1100_s7, %s850_s21  ;;  %p854_p5 = scmp.lt.u32.totalorder %s850_s21, %s1100_s7 }
  0x48   :  { %p856_p6 = pnand %p854_p5, %p851_p4 }
  0x4a   :  { %859 = shalt.err (!%p856_p6)
}
  0x4b   :  { %s860_s24 = scalar_lea.vmem %s76_s30, 2048  ;;  %p865_p8 = scmp.lt.s32.totalorder %s76_s30, %s76_s30 }
  0x4c   :  { %p861_p7 = scmp.ne.s32.totalorder %s76_s30, %s860_s24  ;;  %p866_p9 = scmp.lt.s32.totalorder %s860_s24, %s860_s24 }
  0x4e   :  { %p867_p10 = por %p866_p9, %p865_p8 }
  0x50   :  { %p868_p11 = pnand %p867_p10, %p861_p7 }
  0x52   :  { %871 = shalt.err (!%p868_p11)
}
  0x53   :  { %81 = dma.hbm_to_vmem [thread:$0]  %s1100_s7, 2048, %s76_s30, [#allocation9], %s903_s19, %s903_s19, %s904_s20  }
  0x54   :  { %894 = dma.done.wait [#allocation3], 128  }
  0x55   :  { %895 = vsyncadd [#allocation3], 4294967168 }
  0x56   :  { %896 = dma.done.wait [#allocation6], 2560  }
  0x57   :  { %897 = vsyncadd [#allocation6], 4294964736 }
  0x58   :  { %898 = dma.done.wait [#allocation9], 4096  }
  0x59   :  { %899 = vsyncadd [#allocation9], 4294963200  ;;  %v909_v0 = vmov 0.0|0.0   ;;  %vm910_vm0 = vmmov 0   ;;  %v911_v1 = vmov 0.0   ;;  %v100_v2 = vld [vmem:[#allocation5] sm:$0xff] }
  0x5a   :  { %669 = vmatprep.subr.bf16.mxu0 %v909_v0  ;;  %561 = vmatprep.mubr.msk.f32.mxu0 %vm910_vm0, %v911_v1  ;;  %v101_v3 = vld [vmem:[#allocation5 + $0x8] sm:$0xff]  ;;  %v102_v4 = vld [vmem:[#allocation5 + $0x10] sm:$0xff]  ;;  %v103_v6 = vld [vmem:[#allocation5 + $0x18] sm:$0xff]  ;;  %vm111_vm1 = vcmask 261120   ;;  %s912_s11 = smov [#allocation11]  }
  0x5b   :  { %675 = vmatprep.subr.bf16.mxu1 %v909_v0  ;;  %596 = vmatprep.mubr.msk.f32.mxu1 %vm910_vm0, %v911_v1  ;;  %v670_v5 = vpack.c.bf16 %v101_v3, %v100_v2  ;;  %v186_v7 = vld [vmem:[#allocation7] sm:$0xff]  ;;  %v187_v8 = vld [vmem:[#allocation7 + $0x8] sm:$0xff]  ;;  %v188_v9 = vld [vmem:[#allocation7 + $0x10] sm:$0xff]  ;;  %v673_v11 = vpack.c.bf16 %v103_v6, %v102_v4  ;;  %s480_s12 = sshll.u32 %s912_s11, 4  ;;  %s481_s12 = int_to_ptr.vmem [resolvable:$true] %s480_s12 }
  0x5c   :  { %v189_v10 = vld [vmem:[#allocation7 + $0x18] sm:$0xff]  ;;  %v676_v12 = vpack.c.bf16 %v187_v8, %v186_v7  ;;  %v190_v14 = vld [vmem:[#allocation7 + $0x20] sm:$0xff]  ;;  %v191_v15 = vld [vmem:[#allocation7 + $0x28] sm:$0xff]  ;;  %p877_p13 = scmp.lt.s32.totalorder %s481_s12, %s481_s12 }
  0x5d   :  { %671 = vmatpush3.bf16.msra.mxu0 %v670_v5  ;;  %v679_v13 = vpack.c.bf16 %v189_v10, %v188_v9  ;;  %v99_v16 = vld [vmem:[#allocation2] sm:$0xff]  ;;  %v682_v17 = vpack.c.bf16 %v191_v15, %v190_v14  ;;  %v192_v18 = vld [vmem:[#allocation7 + $0x30] sm:$0xff]  ;;  %v194_v21 = vld [vmem:[#allocation7 + $0x40] sm:$0xff] }
  0x5e   :  { %672 = vmatprep.subr.bf16.mxu0 %v909_v0  ;;  %677 = vmatpush3.bf16.msra.mxu1 %v676_v12  ;;  %v193_v19 = vld [vmem:[#allocation7 + $0x38] sm:$0xff]  ;;  %v195_v22 = vld [vmem:[#allocation7 + $0x48] sm:$0xff]  ;;  %v196_v24 = vld [vmem:[#allocation7 + $0x50] sm:$0xff] }
  0x5f   :  { %678 = vmatprep.subr.bf16.mxu1 %v909_v0  ;;  %v685_v20 = vpack.c.bf16 %v193_v19, %v192_v18  ;;  %v688_v23 = vpack.c.bf16 %v195_v22, %v194_v21  ;;  %v197_v25 = vld [vmem:[#allocation7 + $0x58] sm:$0xff]  ;;  %v198_v27 = vld [vmem:[#allocation7 + $0x60] sm:$0xff]  ;;  %v199_v28 = vld [vmem:[#allocation7 + $0x68] sm:$0xff] }
  0x60   :  { %v691_v26 = vpack.c.bf16 %v197_v25, %v196_v24  ;;  %v694_v29 = vpack.c.bf16 %v199_v28, %v198_v27  ;;  %v200_v30 = vld [vmem:[#allocation7 + $0x70] sm:$0xff]  ;;  %v201_v31 = vld [vmem:[#allocation7 + $0x78] sm:$0xff]  ;;  %v280_v33 = vld [vmem:[#allocation8] sm:$0xff] }
  0x61   :  { %674 = vmatpush3.bf16.msra.mxu0 %v673_v11  ;;  %v697_v32 = vpack.c.bf16 %v201_v31, %v200_v30  ;;  %v281_v34 = vld [vmem:[#allocation8 + $0x8] sm:$0xff]  ;;  %v282_v35 = vld [vmem:[#allocation8 + $0x10] sm:$0xff]  ;;  %v283_v37 = vld [vmem:[#allocation8 + $0x18] sm:$0xff] }
  0x62   :  { %699 = vmatprep.subr.bf16.mxu0 %v909_v0  ;;  %680 = vmatpush3.bf16.msra.mxu1 %v679_v13  ;;  %v700_v36 = vpack.c.bf16 %v281_v34, %v280_v33  ;;  %v703_v38 = vpack.c.bf16 %v283_v37, %v282_v35  ;;  %v284_v39 = vld [vmem:[#allocation8 + $0x20] sm:$0xff]  ;;  %v285_v40 = vld [vmem:[#allocation8 + $0x28] sm:$0xff]  ;;  %v286_v42 = vld [vmem:[#allocation8 + $0x30] sm:$0xff] }
  0x63   :  { %681 = vmatprep.subr.bf16.mxu1 %v909_v0  ;;  %v706_v41 = vpack.c.bf16 %v285_v40, %v284_v39  ;;  %v287_v43 = vld [vmem:[#allocation8 + $0x38] sm:$0xff]  ;;  %v288_v45 = vld [vmem:[#allocation8 + $0x40] sm:$0xff]  ;;  %v289_v46 = vld [vmem:[#allocation8 + $0x48] sm:$0xff] }
  0x64   :  { %562 = vmatmul.mubr.msk.f32.vlgmr.msra.gmra.mrb[0].mxu0 %vm111_vm1, %v99_v16  ;;  %v709_v44 = vpack.c.bf16 %v287_v43, %v286_v42  ;;  %v712_v47 = vpack.c.bf16 %v289_v46, %v288_v45  ;;  %v290_v48 = vld [vmem:[#allocation8 + $0x50] sm:$0xff]  ;;  %v291_v49 = vld [vmem:[#allocation8 + $0x58] sm:$0xff]  ;;  %v292_v51 = vld [vmem:[#allocation8 + $0x60] sm:$0xff] }
  0x65   :  { %631 = vmatprep.mubr.msk.f32.mxu0 %vm910_vm0, %v911_v1  ;;  %701 = vmatpush3.bf16.msra.mxu0 %v700_v36  ;;  %v715_v50 = vpack.c.bf16 %v291_v49, %v290_v48  ;;  %v293_v52 = vld [vmem:[#allocation8 + $0x68] sm:$0xff]  ;;  %v491_v54 = vld [vmem:[%s1095_s2] ss:$0 sm:$0xff]  ;;  %v294_v59 = vld [vmem:[#allocation8 + $0x70] sm:$0xff] }
  0x66   :  { %683 = vmatpush3.bf16.msra.mxu1 %v682_v17  ;;  %702 = vmatprep.subr.bf16.mxu0 %v909_v0  ;;  %v718_v53 = vpack.c.bf16 %v293_v52, %v292_v51  ;;  %v295_v60 = vld [vmem:[#allocation8 + $0x78] sm:$0xff]  ;;  %v374_v62 = vld [vmem:[#allocation10] sm:$0xff]  ;;  %v375_v63 = vld [vmem:[#allocation10 + $0x8] sm:$0xff] }
  0x67   :  { %684 = vmatprep.subr.bf16.mxu1 %v909_v0  ;;  %v721_v61 = vpack.c.bf16 %v295_v60, %v294_v59  ;;  %v376_v2 = vld [vmem:[#allocation10 + $0x10] sm:$0xff]  ;;  %v724_v3 = vpack.c.bf16 %v375_v63, %v374_v62  ;;  %v377_v4 = vld [vmem:[#allocation10 + $0x18] sm:$0xff]  ;;  %v378_v6 = vld [vmem:[#allocation10 + $0x20] sm:$0xff] }
  0x68   :  { %v727_v5 = vpack.c.bf16 %v377_v4, %v376_v2  ;;  %v379_v7 = vld [vmem:[#allocation10 + $0x28] sm:$0xff]  ;;  %v381_v9 = vld [vmem:[#allocation10 + $0x38] sm:$0xff]  ;;  %v382_v11 = vld [vmem:[#allocation10 + $0x40] sm:$0xff] }
  0x69   :  { %704 = vmatpush3.bf16.msra.mxu0 %v703_v38  ;;  %v730_v8 = vpack.c.bf16 %v379_v7, %v378_v6  ;;  %v383_v12 = vld [vmem:[#allocation10 + $0x48] sm:$0xff]  ;;  %v384_v14 = vld [vmem:[#allocation10 + $0x50] sm:$0xff]  ;;  %v385_v15 = vld [vmem:[#allocation10 + $0x58] sm:$0xff] }
  0x6a   :  { %686 = vmatpush3.bf16.msra.mxu1 %v685_v20  ;;  %705 = vmatprep.subr.bf16.mxu0 %v909_v0  ;;  %v736_v13 = vpack.c.bf16 %v383_v12, %v382_v11  ;;  %v739_v16 = vpack.c.bf16 %v385_v15, %v384_v14  ;;  %v386_v17 = vld [vmem:[#allocation10 + $0x60] sm:$0xff]  ;;  %v387_v18 = vld [vmem:[#allocation10 + $0x68] sm:$0xff]  ;;  %v493_v20 = vld [vmem:[%s1097_s4] ss:$0 sm:$0xff] }
  0x6b   :  { %687 = vmatprep.subr.bf16.mxu1 %v909_v0  ;;  %v742_v19 = vpack.c.bf16 %v387_v18, %v386_v17  ;;  %v388_v25 = vld [vmem:[#allocation10 + $0x70] sm:$0xff]  ;;  %v494_v28 = vld [vmem:[%s1099_s6] ss:$0 sm:$0xff]  ;;  %s872_s6 = scalar_lea.vmem %s481_s12, 128 }
  0x6c   :  { %p873_p12 = scmp.ne.s32.totalorder %s481_s12, %s872_s6  ;;  %p878_p0 = scmp.lt.s32.totalorder %s872_s6, %s872_s6 }
  0x6d   :  { %707 = vmatpush3.bf16.msra.mxu0 %v706_v41 }
  0x6e   :  { %689 = vmatpush3.bf16.msra.mxu1 %v688_v23  ;;  %708 = vmatprep.subr.bf16.mxu0 %v909_v0  ;;  %p879_p1 = por %p878_p0, %p877_p13 }
  0x6f   :  { %690 = vmatprep.subr.bf16.mxu1 %v909_v0 }
  0x70   :  { %p880_p2 = pnand %p879_p1, %p873_p12 }
  0x71   :  { %710 = vmatpush3.bf16.msra.mxu0 %v709_v44 }
  0x72   :  { %692 = vmatpush3.bf16.msra.mxu1 %v691_v26  ;;  %711 = vmatprep.subr.bf16.mxu0 %v909_v0  ;;  %v389_v26 = vld [vmem:[#allocation10 + $0x78] sm:$0xff] }
  0x73   :  { %693 = vmatprep.subr.bf16.mxu1 %v909_v0  ;;  %v745_v27 = vpack.c.bf16 %v389_v26, %v388_v25 }
  0x75   :  { %713 = vmatpush3.bf16.msra.mxu0 %v712_v47 }
  0x76   :  { %695 = vmatpush3.bf16.msra.mxu1 %v694_v29  ;;  %714 = vmatprep.subr.bf16.mxu0 %v909_v0 }
  0x77   :  { %696 = vmatprep.subr.bf16.mxu1 %v909_v0 }
  0x79   :  { %716 = vmatpush3.bf16.msra.mxu0 %v715_v50 }
  0x7a   :  { %698 = vmatpush3.bf16.msra.mxu1 %v697_v32  ;;  %717 = vmatprep.subr.bf16.mxu0 %v909_v0  ;;  %v495_v32 = vld [vmem:[%s1101_s8] ss:$0 sm:$0xff] }
  0x7b   :  { %723 = vmatprep.subr.bf16.mxu1 %v909_v0 }
  0x7d   :  { %719 = vmatpush3.bf16.msra.mxu0 %v718_v53 }
  0x7e   :  { %720 = vmatprep.subr.bf16.mxu0 %v909_v0 }
  0x81   :  { %722 = vmatpush3.bf16.msra.mxu0 %v721_v61 }
 0x137   :  { %v181_v55 = vpop.f32.mrb[0].mxu0 }
 0x138   :  { %v182_v56 = vadd.f32 %v491_v54, %v181_v55  ;;  %v563_v57 = vpop.f32.mrb[1].mxu0 }
 0x13a   :  { %v185_v58 = vmax.f32 %v182_v56, 0.0 }
 0x13c   :  { %597 = vmatmul.mubr.f32.vlgmr.msra.gmra.mrb[0].mxu1 %v185_v58 }
 0x13d   :  { %666 = vmatprep.mubr.msk.f32.mxu1 %vm910_vm0, %v911_v1  ;;  %725 = vmatpush3.bf16.msra.mxu1 %v724_v3  ;;  %v380_v1 = vld [vmem:[#allocation10 + $0x30] sm:$0xff] }
 0x13e   :  { %726 = vmatprep.subr.bf16.mxu1 %v909_v0  ;;  %v733_v10 = vpack.c.bf16 %v381_v9, %v380_v1 }
 0x141   :  { %728 = vmatpush3.bf16.msra.mxu1 %v727_v5 }
 0x142   :  { %729 = vmatprep.subr.bf16.mxu1 %v909_v0 }
 0x145   :  { %731 = vmatpush3.bf16.msra.mxu1 %v730_v8 }
 0x146   :  { %732 = vmatprep.subr.bf16.mxu1 %v909_v0 }
 0x149   :  { %734 = vmatpush3.bf16.msra.mxu1 %v733_v10 }
 0x14a   :  { %735 = vmatprep.subr.bf16.mxu1 %v909_v0 }
 0x14d   :  { %737 = vmatpush3.bf16.msra.mxu1 %v736_v13 }
 0x14e   :  { %738 = vmatprep.subr.bf16.mxu1 %v909_v0 }
 0x151   :  { %740 = vmatpush3.bf16.msra.mxu1 %v739_v16 }
 0x152   :  { %741 = vmatprep.subr.bf16.mxu1 %v909_v0 }
 0x155   :  { %743 = vmatpush3.bf16.msra.mxu1 %v742_v19 }
 0x156   :  { %744 = vmatprep.subr.bf16.mxu1 %v909_v0 }
 0x159   :  { %746 = vmatpush3.bf16.msra.mxu1 %v745_v27 }
 0x20f   :  { %v275_v21 = vpop.f32.mrb[0].mxu1 }
 0x210   :  { %v276_v22 = vadd.f32 %v493_v20, %v275_v21  ;;  %v598_v23 = vpop.f32.mrb[1].mxu1 }
 0x212   :  { %v279_v24 = vmax.f32 %v276_v22, 0.0 }
 0x214   :  { %632 = vmatmul.mubr.f32.vlgmr.msra.gmra.mrb[2].mxu0 %v279_v24 }
 0x2e7   :  { %v369_v29 = vpop.f32.mrb[2].mxu0 }
 0x2e8   :  { %v370_v30 = vadd.f32 %v494_v28, %v369_v29  ;;  %v633_v0 = vpop.f32.mrb[3].mxu0 }
 0x2ea   :  { %v373_v31 = vmax.f32 %v370_v30, 0.0 }
 0x2ec   :  { %667 = vmatmul.mubr.f32.vlgmr.msra.gmra.mrb[2].mxu1 %v373_v31 }
 0x3bf   :  { %v463_v33 = vpop.f32.mrb[2].mxu1 }
 0x3c0   :  { %v464_v34 = vadd.f32 %v495_v32, %v463_v33  ;;  %v668_v35 = vpop.f32.mrb[3].mxu1 }
 0x3c2   :  { %v496_v36 = vmul.f32 -1.442695, %v464_v34 }
 0x3c4   :  { %758 = vpow2.f32 %v496_v36 }
 0x3ce   :  { %v759_v37 = vpop.eup %758 }
 0x3cf   :  { %v470_v38 = vadd.f32 1.0, %v759_v37 }
 0x3d1   :  { %760 = vrcp.f32 %v470_v38 }
 0x3db   :  { %v761_v39 = vpop.eup %760 }
 0x3dc   :  { %473 = vst [vmem:[#allocation11] sm:$0xff] %v761_v39 }
 0x3dd   :  { %883 = shalt.err (!%p880_p2)
}
 0x3de   :  { %s884_s1 = scalar_lea.hbm %s1102_s9, 128 }
 0x3df   :  { %p885_p3 = scmp.ne.s32.totalorder %s1102_s9, %s884_s1  ;;  %p888_p4 = scmp.lt.u32.totalorder %s884_s1, %s1102_s9 }
 0x3e1   :  { %p890_p5 = pnand %p888_p4, %p885_p3 }
 0x3e3   :  { %893 = shalt.err (!%p890_p5)
}
 0x3e4   :  { %483 = dma.vmem_to_hbm [thread:$0]  %s481_s12, 128, %s1102_s9, [#allocation4]  }
 0x3e5   :  { %900 = dma.done.wait [#allocation4], 128  }
 0x3e6   :  { %901 = vsyncadd [#allocation4], 4294967168 }
 0x3e7   :  { %487 = vsyncpa [#allocation3], 1 }
 0x3e8   :  { %488 = vsyncpa [#allocation6], 1 }
 0x3e9   :  { %489 = vsyncpa [#allocation9], 1 }
 0x3ea   :  { %490 = vsyncpa [#allocation4], 1 }

</bundles_post_ra>
